<compile_context>
chip_gen: v7x
topology: tpu7x:2x2x1
jax: 0.10.0
libtpu: 0.0.40
codegen_flags: <defaults>
</compile_context>

<pallas_src>
import jax
import jax.numpy as jnp
from jax.experimental import pallas as pl
from jax.experimental.pallas import tpu as pltpu


def mlp_kernel(x_ref, w1_ref, b1_ref, w2_ref, b2_ref, o_ref):
    # x_ref:  (1, tm)   batch tile on lanes
    # w1_ref: (H, 1), b1_ref: (H, 1), w2_ref: (H, 1), b2_ref: (1, 1)
    # o_ref:  (1, tm)
    x = x_ref[...]                                              # (1, tm)
    h = jnp.maximum(w1_ref[...] * x + b1_ref[...], 0.0)         # (H, tm)  VPU
    y = jnp.sum(h * w2_ref[...], axis=0, keepdims=True)         # (1, tm)  XLU reduce
    o_ref[...] = (y + b2_ref[...]).astype(o_ref.dtype)


def net_forward(x, w1, b1, w2, b2, *, tm=256):
    """Net forward for the script's config.

    x: (N, 1); w1: (H, 1); b1: (H,); w2: (1, H); b2: (1,) — PyTorch nn.Linear
    layout.  Returns (N, 1) float32.
    """
    n, in_f = x.shape
    hidden = w1.shape[0]
    out_f = w2.shape[0]
    # Kernel is specialized to the scalar-in / scalar-out regression Net used
    # in the original script (x: (N,1) -> y: (N,1)).
    assert in_f == 1 and out_f == 1, "kernel specialized to in_features=out_features=1"
    assert hidden % 8 == 0, "hidden must be a multiple of 8 (sublane packing)"
    assert tm % 128 == 0, "tile must be lane-dense (multiple of 128)"

    # Batch onto the lane axis, zero-padded to a tile multiple (exact through
    # the linear+ReLU+linear graph; padded rows are sliced away below).
    np_ = pl.cdiv(n, tm) * tm
    x_lane = jnp.pad(x[:, 0].astype(jnp.float32), (0, np_ - n)).reshape(1, np_)

    # Parameter relayouts (each moves at most H scalars — no real transpose).
    w1_col = w1.reshape(hidden, 1).astype(jnp.float32)
    b1_col = b1.reshape(hidden, 1).astype(jnp.float32)
    w2_col = w2.reshape(hidden, 1).astype(jnp.float32)
    b2_sc = b2.reshape(1, 1).astype(jnp.float32)

    grid = (np_ // tm,)
    y_lane = pl.pallas_call(
        mlp_kernel,
        out_shape=jax.ShapeDtypeStruct((1, np_), jnp.float32),
        grid_spec=pltpu.PrefetchScalarGridSpec(
            num_scalar_prefetch=0,
            grid=grid,
            in_specs=[
                pl.BlockSpec((1, tm), lambda i: (0, i)),        # x tile (pipelined)
                pl.BlockSpec((hidden, 1), lambda i: (0, 0)),    # w1 (VMEM-resident)
                pl.BlockSpec((hidden, 1), lambda i: (0, 0)),    # b1
                pl.BlockSpec((hidden, 1), lambda i: (0, 0)),    # w2
                pl.BlockSpec((1, 1), lambda i: (0, 0)),         # b2
            ],
            out_specs=pl.BlockSpec((1, tm), lambda i: (0, i)),  # lane-dense output
        ),
        compiler_params=pltpu.CompilerParams(
            dimension_semantics=("parallel",),        # megacore / v7x 2-TC sharding
            vmem_limit_bytes=16 * 1024 * 1024,        # explicit; well under v7x 64 MiB
        ),
    )(x_lane, w1_col, b1_col, w2_col, b2_sc)

    return y_lane[0, :n].reshape(n, 1)


def reference_forward(x, w1, b1, w2, b2):
    h = jnp.maximum(x @ w1.T + b1, 0.0)
    return h @ w2.T + b2


if __name__ == "__main__":
    # Module config from the script: Net(input_feature=1, num_hidden=32, num_output=1)
    input_feature, num_hidden, num_output = 1, 32, 1
    batch = 1000  # scaled-down version of the script's 10000-point linspace

    key = jax.random.PRNGKey(0)
    kw1, kb1, kw2, kb2 = jax.random.split(key, 4)

    x = jnp.linspace(-3.0, 3.0, batch, dtype=jnp.float32).reshape(batch, input_feature)

    # Deterministic parameter init (PyTorch-Linear-style uniform bounds)
    bound1 = 1.0 / jnp.sqrt(jnp.float32(input_feature))
    bound2 = 1.0 / jnp.sqrt(jnp.float32(num_hidden))
    w1 = jax.random.uniform(kw1, (num_hidden, input_feature), jnp.float32, -bound1, bound1)
    b1 = jax.random.uniform(kb1, (num_hidden,), jnp.float32, -bound1, bound1)
    w2 = jax.random.uniform(kw2, (num_output, num_hidden), jnp.float32, -bound2, bound2)
    b2 = jax.random.uniform(kb2, (num_output,), jnp.float32, -bound2, bound2)

    y = net_forward(x, w1, b1, w2, b2)
    jax.block_until_ready(y)

    y_ref = reference_forward(x, w1, b1, w2, b2)
    assert y.shape == (batch, num_output)
    assert jnp.allclose(y, y_ref, atol=1e-5, rtol=1e-5), "Pallas kernel mismatch vs reference"

    print("KERNEL_OK")
</pallas_src>

<mosaic_0001>
module attributes {stable_mosaic.version = 11 : i64} {
  func.func @mlp_kernel(%arg0: i32, %arg1: memref<1x256xf32, #tpu.memory_space<vmem>>, %arg2: memref<32x1xf32, #tpu.memory_space<vmem>>, %arg3: memref<32x1xf32, #tpu.memory_space<vmem>>, %arg4: memref<32x1xf32, #tpu.memory_space<vmem>>, %arg5: memref<1x1xf32, #tpu.memory_space<vmem>>, %arg6: memref<1x256xf32, #tpu.memory_space<vmem>>) attributes {dimension_semantics = [#tpu.dimension_semantics<parallel>], iteration_bounds = array<i64: 4>, scalar_prefetch = 0 : i64, scratch_operands = 0 : i64, tpu.core_type = #tpu.core_type<tc>, window_params = [{transform_indices = @transform_0, window_bounds = array<i64: 1, 256>}, {pipeline_mode = #tpu.pipeline_mode<synchronous>, transform_indices = @transform_1, window_bounds = array<i64: 32, 1>}, {pipeline_mode = #tpu.pipeline_mode<synchronous>, transform_indices = @transform_2, window_bounds = array<i64: 32, 1>}, {pipeline_mode = #tpu.pipeline_mode<synchronous>, transform_indices = @transform_3, window_bounds = array<i64: 32, 1>}, {pipeline_mode = #tpu.pipeline_mode<synchronous>, transform_indices = @transform_4, window_bounds = array<i64: 1, 1>}, {transform_indices = @transform_5, window_bounds = array<i64: 1, 256>}]} {
    %c0 = arith.constant 0 : index
    %c0_0 = arith.constant 0 : index
    %0 = vector.load %arg1[%c0, %c0_0] : memref<1x256xf32, #tpu.memory_space<vmem>>, vector<1x256xf32>
    %c0_1 = arith.constant 0 : index
    %c0_2 = arith.constant 0 : index
    %1 = vector.load %arg2[%c0_1, %c0_2] : memref<32x1xf32, #tpu.memory_space<vmem>>, vector<32x1xf32>
    %2 = vector.broadcast %1 : vector<32x1xf32> to vector<32x256xf32>
    %3 = vector.broadcast %0 : vector<1x256xf32> to vector<32x256xf32>
    %4 = arith.mulf %2, %3 : vector<32x256xf32>
    %c0_3 = arith.constant 0 : index
    %c0_4 = arith.constant 0 : index
    %5 = vector.load %arg3[%c0_3, %c0_4] : memref<32x1xf32, #tpu.memory_space<vmem>>, vector<32x1xf32>
    %6 = vector.broadcast %5 : vector<32x1xf32> to vector<32x256xf32>
    %7 = arith.addf %4, %6 : vector<32x256xf32>
    %cst = arith.constant 0.000000e+00 : f32
    %8 = vector.broadcast %cst : f32 to vector<32x256xf32>
    %9 = arith.maximumf %7, %8 : vector<32x256xf32>
    %c0_5 = arith.constant 0 : index
    %c0_6 = arith.constant 0 : index
    %10 = vector.load %arg4[%c0_5, %c0_6] : memref<32x1xf32, #tpu.memory_space<vmem>>, vector<32x1xf32>
    %11 = vector.broadcast %10 : vector<32x1xf32> to vector<32x256xf32>
    %12 = arith.mulf %9, %11 : vector<32x256xf32>
    %cst_7 = arith.constant dense<0.000000e+00> : vector<256xf32>
    %13 = vector.multi_reduction <add>, %12, %cst_7 [0] : vector<32x256xf32> to vector<256xf32>
    %14 = vector.shape_cast %13 : vector<256xf32> to vector<1x256xf32>
    %c0_8 = arith.constant 0 : index
    %c0_9 = arith.constant 0 : index
    %15 = vector.load %arg5[%c0_8, %c0_9] : memref<1x1xf32, #tpu.memory_space<vmem>>, vector<1x1xf32>
    %16 = vector.broadcast %15 : vector<1x1xf32> to vector<1x256xf32>
    %17 = arith.addf %14, %16 : vector<1x256xf32>
    %c0_10 = arith.constant 0 : index
    %c0_11 = arith.constant 0 : index
    %18 = vector.load %arg6[%c0_10, %c0_11] : memref<1x256xf32, #tpu.memory_space<vmem>>, vector<1x256xf32>
    tpu.vector_store %arg6[%c0_10, %c0_11], %17 {strides = array<i32>} : memref<1x256xf32, #tpu.memory_space<vmem>>, vector<1x256xf32>,
    return
  }
  func.func @transform_0(%arg0: i32) -> (i32, i32) {
    %c0_i32 = arith.constant 0 : i32
    %c0_i32_0 = arith.constant 0 : i32
    return %c0_i32, %arg0 : i32, i32
  }
  func.func @transform_1(%arg0: i32) -> (i32, i32) {
    %c0_i32 = arith.constant 0 : i32
    %c0_i32_0 = arith.constant 0 : i32
    %c0_i32_1 = arith.constant 0 : i32
    return %c0_i32, %c0_i32_0 : i32, i32
  }
  func.func @transform_2(%arg0: i32) -> (i32, i32) {
    %c0_i32 = arith.constant 0 : i32
    %c0_i32_0 = arith.constant 0 : i32
    %c0_i32_1 = arith.constant 0 : i32
    return %c0_i32, %c0_i32_0 : i32, i32
  }
  func.func @transform_3(%arg0: i32) -> (i32, i32) {
    %c0_i32 = arith.constant 0 : i32
    %c0_i32_0 = arith.constant 0 : i32
    %c0_i32_1 = arith.constant 0 : i32
    return %c0_i32, %c0_i32_0 : i32, i32
  }
  func.func @transform_4(%arg0: i32) -> (i32, i32) {
    %c0_i32 = arith.constant 0 : i32
    %c0_i32_0 = arith.constant 0 : i32
    %c0_i32_1 = arith.constant 0 : i32
    return %c0_i32, %c0_i32_0 : i32, i32
  }
  func.func @transform_5(%arg0: i32) -> (i32, i32) {
    %c0_i32 = arith.constant 0 : i32
    %c0_i32_0 = arith.constant 0 : i32
    return %c0_i32, %arg0 : i32, i32
  }
}

</mosaic_0001>

<bundles_post_ra>
// kernel: tpu_custom_call.1
= control target key start
LH: loop header
LB: loop body
LE: loop exit
PB: predicated region body
PF: predicated region fallthrough
CT: control target
= control target key end

     0   :  { %s766_s0 = inlined_call_operand.vmem [shape: f32[1,1024], index: 0, kind: input, shape index: {}]   ;;  %s767_s1 = inlined_call_operand.vmem [shape: f32[32,1], index: 1, kind: input, shape index: {}]   ;;  %s768_s2 = inlined_call_operand.vmem [shape: f32[32,1], index: 2, kind: input, shape index: {}]   ;;  %s769_s3 = inlined_call_operand.vmem [shape: f32[32,1], index: 3, kind: input, shape index: {}]   ;;  %s770_s4 = inlined_call_operand.<no memory space> [shape: f32[1,1], index: 4, kind: input, shape index: {}]   ;;  %s771_s5 = inlined_call_operand.hbm [shape: f32[1,1024], index: 5, kind: output, shape index: {}]  }
   0x1   :  { %v10_v0 = vstv %s770_s4 }
   0x2   :  { %11 = vst [vmem:[#allocation2] sm:$0x1] %v10_v0 }
   0x3   :  { %12 = vsyncpa [#allocation4], 0 }
   0x4   :  { %14 = vsyncpa [#allocation4 + $0x1], 0  ;;  %s620_s20 = smov 0   ;;  %s622_s21 = smov 0  }
   0x5   :  { %s624_s22 = smov 0   ;;  %s626_s23 = smov 0  }
   0x6 LB: > { %s641_s4 = sadd.s32 4294967295, %s582_s23   ;;  %s465_s24 = sadd.s32 4294967294, %s582_s23   ;;  %s582_s23 = sphi %s626_s23, %s777_s23   ;;  %s578_s22 = sphi %s624_s22, %s776_s22   ;;  %s574_s21 = sphi %s622_s21, %s775_s21   ;;  %s570_s20 = sphi %s620_s20, %s774_s20  }
   0x7   : > { %s645_s25 = sadd.s32 1, %s582_s23   ;;  %s137_s26 = sadd.s32 1, %s578_s22 }
   0x8   : > { %s134_s27 = ssub.s32 %s582_s23, %s645_s25  ;;  %p147_p0 = scmp.ne.s32.totalorder %s578_s22, %s574_s21 }
   0x9   : > { %p135_p1 = scmp.eq.s32.totalorder %s134_s27, 0  ;;  %p148_p2 = scmp.eq.s32.totalorder %s641_s4, 3 }
   0xa   : > { %p153_p3 = scmp.ne.s32.totalorder %s574_s21, %s570_s20  ;;  %p154_p4 = scmp.eq.s32.totalorder %s465_s24, 3 }
   0xb   : > { %s656_s28 = scalar_select %p135_p1, %s578_s22, %s137_s26  }
   0xc   : > { %p658_p5 = por %p148_p2, %p147_p0  ;;  %p662_p6 = por %p154_p4, %p153_p3 }
   0xd   : > { %p468_p7 = scmp.ge.s32.totalorder %s582_s23, 1  ;;  %p192_p8 = scmp.lt.s32.totalorder %s582_s23, 5 }
   0xf   : > { %p193_p9 = pnand %p468_p7, %p192_p8 }
  0x10   : > { %v228_v1 = vld [vmem:[%s767_s1 + $0x10] sm:$0xff] (!%p193_p9)  ;;  %v226_v2 = vld [vmem:[%s767_s1] sm:$0xff] (!%p193_p9)  ;;  %v584_v3 = vmov (!%p193_p9), 0   ;;  %v227_v5 = vld [vmem:[%s767_s1 + $0x8] sm:$0xff] (!%p193_p9)  ;;  %s470_s13 = sshll.u32 (!%p193_p9), %s641_s4, 1  ;;  %v251_v15 = vlaneseq (!%p193_p9)  ;;  %s216_s17 = sand.u32 (!%p193_p9), 1, %s574_s21  }
  0x11   : > { %196 = sbr.rel (%p193_p9) target bundleno = 206 (0xce), region = 40  ;;  %519 = vset.pattern.permute.xlu1 (!%p193_p9), %v584_v3  ;;  %518 = vset.pattern.permute.xlu0 (!%p193_p9), %v584_v3  ;;  %v269_v4 = vld [vmem:[%s768_s2] sm:$0xff] (!%p193_p9)  ;;  %v229_v6 = vld [vmem:[%s767_s1 + $0x18] sm:$0xff] (!%p193_p9)  ;;  %v270_v7 = vld [vmem:[%s768_s2 + $0x8] sm:$0xff] (!%p193_p9)  ;;  %p220_p10 = scmp.lt.s32.totalorder (!%p193_p9), %s470_s13, 7 }
  0x12   : > { %242 = vperm.xlu1 (!%p193_p9), %519, %v228_v1   ;;  %232 = vperm.xlu0 (!%p193_p9), %518, %v226_v2   ;;  %v272_v8 = vld [vmem:[%s768_s2 + $0x18] sm:$0xff] (!%p193_p9)  ;;  %v271_v9 = vld [vmem:[%s768_s2 + $0x10] sm:$0xff] (!%p193_p9)  ;;  %v310_v10 = vld [vmem:[%s769_s3 + $0x8] sm:$0xff] (!%p193_p9)  ;;  %v706_v16 = vshrl.u32 (!%p193_p9), %v251_v15, 7  ;;  %s469_s18 = sshll.u32 (!%p193_p9), %s216_s17, 1  ;;  %s476_s19 = sshll.u32 (!%p193_p9), %s641_s4, 5 }
  0x13   : > { %v309_v11 = vld [vmem:[%s769_s3] sm:$0xff] (!%p193_p9)  ;;  %v312_v12 = vld [vmem:[%s769_s3 + $0x18] sm:$0xff] (!%p193_p9)  ;;  %v311_v13 = vld [vmem:[%s769_s3 + $0x10] sm:$0xff] (!%p193_p9)  ;;  %s218_s24 = scalar_lea.vmem (!%p193_p9), [#allocation3], %s469_s18  ;;  %vm391_vm0 = vcmp.lt.s32.totalorder (!%p193_p9), %v251_v15, 256  ;;  %s724_s7 = scalar_lea.hbm (!%p193_p9), %s771_s5, %s476_s19 }
  0x14   : > { %v359_v14 = vld [vmem:[#allocation2] sm:$0x1] (!%p193_p9)  ;;  %v253_v17 = vsub.s32 (!%p193_p9), 0, %v706_v16  ;;  %v257_v18 = vsub.s32 (!%p193_p9), 1, %v706_v16  ;;  %s409_s26 = sshll.u32 (!%p193_p9), %s218_s24, 4  ;;  %s395_s8 = scalar_lea.sflag (!%p193_p9), [#allocation4], %s216_s17  ;;  %s726_s26 = int_to_ptr.vmem [resolvable:$true] %s409_s26 }
  0x15   : > { %s520_s9 = scalar_lea.vmem (!%p193_p9), %s726_s26, 32  ;;  %s586_s4 = smov (!%p193_p9), [#allocation3]  }
  0x16   : > { %275 = vperm.xlu1 (!%p193_p9), %519, %v269_v4   ;;  %237 = vperm.xlu0 (!%p193_p9), %518, %v227_v5   ;;  %p521_p11 = scmp.ne.s32.totalorder (!%p193_p9), %s726_s26, %s520_s9  ;;  %s524_s10 = sshll.u32 (!%p193_p9), %s586_s4, 4  ;;  %s525_s10 = int_to_ptr.vmem [resolvable:$false] %s524_s10 }
  0x17   : > { %s526_s11 = scalar_lea.vmem (!%p193_p9), %s525_s10, 64  ;;  %p527_p0 = scmp.lt.s32.totalorder (!%p193_p9), %s726_s26, %s525_s10 }
  0x18   : > { %s779_s13 = smov (!%p220_p10, %s470_s13), 7  ;;  %p522_p12 = pnand %p521_p11, %p658_p5 }
  0x19   : > { %s222_s16 = scalar_lea.vmem %s766_s0, %s779_s13  ;;  %p528_p1 = scmp.lt.s32.totalorder %s526_s11, %s520_s9 }
  0x1a   : > { %247 = vperm.xlu1 %519, %v229_v6   ;;  %280 = vperm.xlu0 %518, %v270_v7   ;;  %v225_v21 = vld [vmem:[%s222_s16] sm:$0x3]  ;;  %p523_p13 = pneg %p522_p12 }
  0x1b   : > { %v254_v22 = vrot.slane %v225_v21, %v253_v17  ;;  %v258_v23 = vrot.slane %v225_v21, %v257_v18  ;;  %p529_p2 = por %p528_p1, %p527_p0 }
  0x1d   : > { %p530_p3 = pnand %p529_p2, %p523_p13 }
  0x1e   : > { %290 = vperm.xlu1 %519, %v272_v8   ;;  %285 = vperm.xlu0 %518, %v271_v9  }
  0x22   : > { %320 = vperm.xlu1 %519, %v310_v10   ;;  %315 = vperm.xlu0 %518, %v309_v11  }
  0x26   : > { %330 = vperm.xlu1 %519, %v312_v12   ;;  %325 = vperm.xlu0 %518, %v311_v13   ;;  %v585_v12 = vmov 1966171168  }
  0x27   : > { %v375_v13 = vunpack.c.l.s4 %v585_v12 }
  0x2a   : > { %362 = vperm.xlu0 %518, %v359_v14  }
  0x91   : > { %v243_v19 = vpop.permute.xlu1 %242  ;;  %v233_v20 = vpop.permute.xlu0 %232 }
  0x92   : > { %v261_v26 = vmul.f32 %v254_v22, %v233_v20  ;;  %v262_v27 = vmul.f32 %v258_v23, %v233_v20  ;;  %v265_v38 = vmul.f32 %v254_v22, %v243_v19  ;;  %v266_v39 = vmul.f32 %v258_v23, %v243_v19 }
  0x95   : > { %v276_v24 = vpop.permute.xlu1 %275  ;;  %v238_v25 = vpop.permute.xlu0 %237 }
  0x96   : > { %v263_v30 = vmul.f32 %v254_v22, %v238_v25  ;;  %v264_v31 = vmul.f32 %v258_v23, %v238_v25  ;;  %v293_v32 = vadd.f32 %v276_v24, %v261_v26  ;;  %v294_v33 = vadd.f32 %v276_v24, %v262_v27 }
  0x98   : > { %v301_v40 = vmax.f32 %v293_v32, 0.0  ;;  %v302_v41 = vmax.f32 %v294_v33, 0.0 }
  0x99   : > { %v248_v28 = vpop.permute.xlu1 %247  ;;  %v281_v29 = vpop.permute.xlu0 %280 }
  0x9a   : > { %v295_v34 = vadd.f32 %v281_v29, %v263_v30  ;;  %v296_v35 = vadd.f32 %v281_v29, %v264_v31  ;;  %v267_v42 = vmul.f32 %v254_v22, %v248_v28  ;;  %v268_v43 = vmul.f32 %v258_v23, %v248_v28 }
  0x9b   : > { %v376_v22 = vunpack.c.0.s8 %v375_v13 }
  0x9c   : > { %v303_v44 = vmax.f32 %v295_v34, 0.0  ;;  %v304_v45 = vmax.f32 %v296_v35, 0.0 }
  0x9d   : > { %v291_v36 = vpop.permute.xlu1 %290  ;;  %v286_v37 = vpop.permute.xlu0 %285  ;;  %v379_v28 = vsub.s32 %v376_v22, %v706_v16 }
  0x9e   : > { %v297_v46 = vadd.f32 %v286_v37, %v265_v38  ;;  %v298_v47 = vadd.f32 %v286_v37, %v266_v39  ;;  %v299_v48 = vadd.f32 %v291_v36, %v267_v42  ;;  %v300_v49 = vadd.f32 %v291_v36, %v268_v43 }
  0xa0   : > { %v305_v56 = vmax.f32 %v297_v46, 0.0  ;;  %v306_v57 = vmax.f32 %v298_v47, 0.0  ;;  %v307_v58 = vmax.f32 %v299_v48, 0.0  ;;  %v308_v59 = vmax.f32 %v300_v49, 0.0 }
  0xa1   : > { %v321_v50 = vpop.permute.xlu1 %320  ;;  %v316_v51 = vpop.permute.xlu0 %315 }
  0xa2   : > { %v335_v52 = vmul.f32 %v321_v50, %v303_v44  ;;  %v336_v53 = vmul.f32 %v321_v50, %v304_v45  ;;  %v333_v54 = vmul.f32 %v316_v51, %v301_v40  ;;  %v334_v55 = vmul.f32 %v316_v51, %v302_v41 }
  0xa4   : > { %v341_v62 = vadd.f32 %v335_v52, %v333_v54  ;;  %v350_v63 = vadd.f32 %v336_v53, %v334_v55 }
  0xa5   : > { %v331_v60 = vpop.permute.xlu1 %330  ;;  %v326_v61 = vpop.permute.xlu0 %325 }
  0xa6   : > { %v337_v0 = vmul.f32 %v326_v61, %v305_v56  ;;  %v338_v1 = vmul.f32 %v326_v61, %v306_v57  ;;  %v339_v2 = vmul.f32 %v331_v60, %v307_v58  ;;  %v340_v3 = vmul.f32 %v331_v60, %v308_v59 }
  0xa8   : > { %v342_v4 = vadd.f32 %v341_v62, %v337_v0  ;;  %v351_v5 = vadd.f32 %v350_v63, %v338_v1 }
  0xa9   : > { %v363_v21 = vpop.permute.xlu0 %362 }
  0xaa   : > { %v343_v6 = vadd.f32 %v342_v4, %v339_v2  ;;  %v352_v7 = vadd.f32 %v351_v5, %v340_v3  ;;  %v368_v27 = vrot.slane %v363_v21, %v253_v17 }
  0xac   : > { %v344_v8 = vrot.slane %v343_v6, 4  ;;  %v353_v9 = vrot.slane %v352_v7, 4 }
  0xae   : > { %v345_v10 = vadd.f32 %v344_v8, %v343_v6  ;;  %v354_v11 = vadd.f32 %v353_v9, %v352_v7 }
  0xb0   : > { %v346_v14 = vrot.slane %v345_v10, 2  ;;  %v355_v18 = vrot.slane %v354_v11, 2 }
  0xb2   : > { %v347_v19 = vadd.f32 %v346_v14, %v345_v10  ;;  %v356_v20 = vadd.f32 %v355_v18, %v354_v11 }
  0xb4   : > { %v348_v23 = vrot.slane %v347_v19, 1  ;;  %v357_v24 = vrot.slane %v356_v20, 1 }
  0xb6   : > { %v349_v25 = vadd.f32 %v348_v23, %v347_v19  ;;  %v358_v26 = vadd.f32 %v357_v24, %v356_v20 }
  0xb8   : > { %v369_v29 = vadd.f32 %v368_v27, %v349_v25  ;;  %v370_v30 = vadd.f32 %v368_v27, %v358_v26 }
  0xba   : > { %v373_v31 = vcombine.low %v369_v29, %v370_v30 }
  0xbc   : > { %v380_v32 = vrot.slane %v373_v31, %v379_v28 }
  0xbe   : > { %v387_v33 = vrot.slane %v380_v32, %v379_v28 }
  0xc0   : > { %393 = vst.msk [vmem:[%s218_s24] sm:$0x3] %vm391_vm0, %v387_v33 }
  0xc1   : > { %533 = shalt.err (!%p530_p3)
}
  0xc2   : > { %s534_s12 = scalar_lea.hbm %s724_s7, 32  ;;  %s538_s15 = scalar_lea.hbm %s771_s5, 128 }
  0xc3   : > { %p535_p4 = scmp.ne.s32.totalorder %s724_s7, %s534_s12  ;;  %p539_p9 = scmp.lt.u32.totalorder %s724_s7, %s771_s5 }
  0xc4   : > { %p540_p10 = scmp.lt.u32.totalorder %s538_s15, %s534_s12  ;;  %p542_p12 = scmp.lt.u32.totalorder %s534_s12, %s724_s7 }
  0xc5   : > { %p536_p7 = pnand %p535_p4, %p658_p5 }
  0xc6   : > { %p541_p11 = por %p540_p10, %p539_p9 }
  0xc7   : > { %p537_p8 = pneg %p536_p7 }
  0xc8   : > { %p543_p13 = por %p542_p12, %p541_p11 }
  0xca   : > { %p544_p0 = pnand %p543_p13, %p537_p8 }
  0xcc   : > { %547 = shalt.err (!%p544_p0)
}
  0xcd   : > { %477 = dma.vmem_to_hbm [thread:$0]  (%p658_p5), %s726_s26, 32, %s724_s7, %s395_s8  }
  0xce PF: > { %p483_p1 = scmp.ge.s32.totalorder %s582_s23, 2  ;;  %s421_s18 = sand.u32 1, %s570_s20  }
  0xcf   : > { %s422_s19 = scalar_lea.sflag [#allocation4], %s421_s18 }
  0xd0   : > { %p480_p2 = pnand %p483_p1, %p662_p6 }
  0xd2   : > { %565 = dma.done.wait (!%p480_p2), %s422_s19, 32  }
  0xd3   : > { %567 = vsyncadd (!%p480_p2), %s422_s19, 4294967264  ;;  %p17_p3 = scmp.ge.s32.totalorder %s645_s25, 6   ;;  %s774_s20 = smov %s574_s21 }
  0xd4   : > { %s775_s21 = smov %s578_s22  ;;  %s776_s22 = smov %s656_s28 }
  0xd5   : > { %s777_s23 = smov %s645_s25  ;;  %19 = sbr.rel (!%p17_p3) target bundleno = 6 (0x6), region = 75 }
  0xdc   :  { %427 = vsyncpa [#allocation4], 1 }
  0xdd   :  { %429 = vsyncpa [#allocation4 + $0x1], 1 }

</bundles_post_ra>
